<compile_context>
chip_gen: v6e
topology: v6e:2x2x1
jax: 0.10.0
libtpu: 0.0.40
codegen_flags: <defaults>
</compile_context>

<pallas_src>
import math

import jax
import jax.numpy as jnp
from jax import lax
from jax.experimental import pallas as pl
from jax.experimental.pallas import tpu as pltpu

LANE = 128
NEG_INF = -1e30


def transformer_kernel(tok_ref, sem_ref, pos_ref, qk_ref, mask_ref,
                       w1_ref, b1_ref, w2_ref, b2_ref, out_ref):
    # Single grid step; everything resident in VMEM.
    #   tok_ref  : (B*L, 1)  int32   token ids (column vector)
    #   sem_ref  : (T, D)    f32     semantic embedding table
    #   pos_ref  : (B*L, D)  f32     positional embeddings pre-tiled over batch
    #   qk_ref   : (D, 2D)   f32     fused [Q | K] projection weight
    #   mask_ref : (B*L,B*L) f32     additive block-diagonal mask (0 / -1e30)
    #   w1_ref   : (D, P)    b1_ref : (1, P)
    #   w2_ref   : (P, CP)   b2_ref : (1, CP)   (CP = n_classes padded to 128)
    #   out_ref  : (B*L, CP) f32
    BL = tok_ref.shape[0]
    T, D = sem_ref.shape
    bf16 = jnp.bfloat16

    # --- Embedding gather as a one-hot matmul (in-kernel, no dynamic-index
    #     loads; one-hot is exact 0/1 selection). ---
    tok = tok_ref[...]                                          # (BL, 1) int32
    vocab_iota = lax.broadcasted_iota(jnp.int32, (BL, T), 1)    # (BL, T)
    onehot = (vocab_iota == tok).astype(jnp.float32)
    xs = jnp.dot(onehot.astype(bf16), sem_ref[...].astype(bf16),
                 preferred_element_type=jnp.float32)            # (BL, D) f32

    # attention_input == 'both': x = x_sem + x_pos (pos pre-tiled over batch).
    x = xs + pos_ref[...]                                       # (BL, D) f32

    # Fused Q|K projection: a single MXU push instead of two.
    qk = jnp.dot(x.astype(bf16), qk_ref[...].astype(bf16),
                 preferred_element_type=jnp.float32)            # (BL, 2D)
    qx = qk[:, :D]
    kx = qk[:, D:]

    # Batched attention: one Q @ K^T over the whole slab (contract dim 1 of
    # both operands -> no explicit transpose), block-diagonal additive mask
    # kills cross-batch scores before the softmax.
    scores = lax.dot_general(qx.astype(bf16), kx.astype(bf16),
                             (((1,), (1,)), ((), ())),
                             preferred_element_type=jnp.float32)  # (BL, BL)
    scores = scores * (1.0 / math.sqrt(D)) + mask_ref[...]

    m = jnp.max(scores, axis=-1, keepdims=True)
    e = jnp.exp(scores - m)                    # masked entries underflow to 0
    denom = jnp.sum(e, axis=-1, keepdims=True)
    probs = e / denom                          # exact f32 divide

    # a = probs @ x_sem (cross-batch probs are exactly zero).
    a = jnp.dot(probs.astype(bf16), xs.astype(bf16),
                preferred_element_type=jnp.float32)             # (BL, D)

    h = a + x                                  # == a + x_sem + x_pos

    hid = jnp.dot(h.astype(bf16), w1_ref[...].astype(bf16),
                  preferred_element_type=jnp.float32) + b1_ref[...]
    hid = jnp.maximum(hid, 0.0)                                 # ReLU (f32)
    out = jnp.dot(hid.astype(bf16), w2_ref[...].astype(bf16),
                  preferred_element_type=jnp.float32) + b2_ref[...]
    out_ref[...] = out.astype(out_ref.dtype)                    # lane-dense store


def prepare_params(params, B):
    """One-time packing: fuse Q|K, pad the classifier head to 128 lanes,
    pre-tile pos_emb over the batch, and build the block-diagonal mask.
    Keeps pallas_call input shapes/values stable across forward calls."""
    pos_emb = params["pos_emb"]                 # (L, D)
    L, _ = pos_emb.shape
    W2, b2 = params["W2"], params["b2"]         # (P, C), (1, C)
    P, C = W2.shape
    CP = max(LANE, ((C + LANE - 1) // LANE) * LANE)

    qk = jnp.concatenate([params["Q"], params["K"]], axis=1)    # (D, 2D)
    W2p = jnp.zeros((P, CP), W2.dtype).at[:, :C].set(W2)
    b2p = jnp.zeros((1, CP), b2.dtype).at[:, :C].set(b2)
    pos_tiled = jnp.tile(pos_emb, (B, 1))                       # (B*L, D)

    bids = jnp.repeat(jnp.arange(B, dtype=jnp.int32), L)        # (B*L,)
    mask = jnp.where(bids[:, None] == bids[None, :],
                     0.0, NEG_INF).astype(jnp.float32)          # (B*L, B*L)

    return {
        "sem_emb": params["sem_emb"], "pos_tiled": pos_tiled,
        "qk": qk, "mask": mask,
        "W1": params["W1"], "b1": params["b1"],
        "W2p": W2p, "b2p": b2p,
        "n_classes": C,
    }


def transformer_seq2seq_forward(tokens, prepared):
    """tokens: int32 [B, L]. Returns [B, L, n_classes]."""
    B, L = tokens.shape
    sem_emb = prepared["sem_emb"]          # (T, D)
    pos_tiled = prepared["pos_tiled"]      # (B*L, D)
    qk = prepared["qk"]                    # (D, 2D)
    mask = prepared["mask"]                # (B*L, B*L)
    W1, b1 = prepared["W1"], prepared["b1"]
    W2p, b2p = prepared["W2p"], prepared["b2p"]
    C = prepared["n_classes"]

    T, D = sem_emb.shape
    P = W1.shape[1]
    CP = W2p.shape[1]
    BL = B * L

    tok_col = tokens.reshape(BL, 1).astype(jnp.int32)

    flops = 2 * BL * (T * D + D * 2 * D + 2 * BL * D + D * P + P * CP)
    bytes_accessed = 4 * (BL + T * D + BL * D + D * 2 * D + BL * BL
                          + D * P + P + P * CP + CP + BL * CP)
    cost = pl.CostEstimate(flops=flops, transcendentals=BL * BL,
                           bytes_accessed=bytes_accessed)

    out = pl.pallas_call(
        transformer_kernel,
        out_shape=jax.ShapeDtypeStruct((BL, CP), jnp.float32),
        grid_spec=pltpu.PrefetchScalarGridSpec(
            num_scalar_prefetch=0,
            grid=(1,),                 # whole (tiny) problem in one grid step
            in_specs=[
                pl.BlockSpec((BL, 1), lambda i: (0, 0)),      # tokens
                pl.BlockSpec((T, D), lambda i: (0, 0)),       # sem_emb table
                pl.BlockSpec((BL, D), lambda i: (0, 0)),      # pos_emb (tiled)
                pl.BlockSpec((D, 2 * D), lambda i: (0, 0)),   # fused Q|K
                pl.BlockSpec((BL, BL), lambda i: (0, 0)),     # block-diag mask
                pl.BlockSpec((D, P), lambda i: (0, 0)),       # W1
                pl.BlockSpec((1, P), lambda i: (0, 0)),       # b1
                pl.BlockSpec((P, CP), lambda i: (0, 0)),      # W2 (padded)
                pl.BlockSpec((1, CP), lambda i: (0, 0)),      # b2 (padded)
            ],
            out_specs=pl.BlockSpec((BL, CP), lambda i: (0, 0)),
        ),
        compiler_params=pltpu.CompilerParams(
            dimension_semantics=("arbitrary",)),
        cost_estimate=cost,
    )(tok_col, sem_emb, pos_tiled, qk, mask, W1, b1, W2p, b2p)

    # TODO(synk): on v7x (2 TensorCores) split the batch over a leading
    # "parallel" grid axis so both cores get work; at B*L=16 the fixed
    # per-call overhead dominates, so the single fused step is kept here
    # (right call for single-TC v5e/v6e).

    return out[:, :C].reshape(B, L, C)


def _reference_forward(tokens, params):
    """Pure-JAX fp32 reference mirroring the PyTorch forward (attention_input='both')."""
    x_sem = jnp.take(params["sem_emb"], tokens, axis=0)          # (B, L, D)
    x_pos = jnp.broadcast_to(params["pos_emb"][None], x_sem.shape)
    D = x_sem.shape[-1]
    x = x_sem + x_pos
    Qx = x @ params["Q"]
    Kx = x @ params["K"]
    scores = jnp.einsum("bld,bmd->blm", Qx, Kx) / math.sqrt(D)
    probs = jax.nn.softmax(scores, axis=-1)
    a = jnp.einsum("blm,bmd->bld", probs, x_sem)
    h = a + x_sem + x_pos
    b = h @ params["W1"] + params["b1"]
    return jnp.maximum(b, 0.0) @ params["W2"] + params["b2"]


def init_params(key, T, D, P, C, L):
    ks = jax.random.split(key, 8)
    # kaiming-uniform-ish deterministic init (exact PyTorch init not required).
    def ku(k, shape, fan_in):
        bound = math.sqrt(1.0 / fan_in)
        return jax.random.uniform(k, shape, jnp.float32, -bound, bound)
    return {
        "sem_emb": jax.random.normal(ks[0], (T, D), jnp.float32),
        "pos_emb": jax.random.normal(ks[1], (L, D), jnp.float32),
        "Q": ku(ks[2], (D, D), D),
        "K": ku(ks[3], (D, D), D),
        "W1": ku(ks[4], (D, P), D),
        "b1": ku(ks[5], (1, P), D),
        "W2": ku(ks[6], (P, C), P),
        "b2": ku(ks[7], (1, C), P),
    }


if __name__ == "__main__":
    # Small shapes consistent with the module's forward:
    #   T (vocab) = 32, model_dim = 32, p = 64, n_classes = 16, L (seq) = 8, B = 2
    T, D, P, C, L, B = 32, 32, 64, 16, 8, 2

    key = jax.random.PRNGKey(0)
    k_param, k_tok = jax.random.split(key)
    params = init_params(k_param, T, D, P, C, L)
    tokens = jax.random.randint(k_tok, (B, L), 0, T, dtype=jnp.int32)

    prepared = prepare_params(params, B)   # one-time packing/padding

    out = transformer_seq2seq_forward(tokens, prepared)
    out = jax.block_until_ready(out)

    ref = _reference_forward(tokens, params)
    assert out.shape == (B, L, C)
    # Tolerance re-validated for bf16 MXU operands (f32 accumulation); the
    # softmax now uses an exact divide, so all residual error is bf16 rounding
    # in the matmul inputs.
    assert jnp.allclose(out, ref, atol=3e-2, rtol=3e-2), "mismatch vs reference"

    print("KERNEL_OK")
</pallas_src>

<mosaic_0001>
module attributes {stable_mosaic.version = 11 : i64} {
  func.func @transformer_kernel(%arg0: i32, %arg1: memref<16x1xi32, #tpu.memory_space<vmem>>, %arg2: memref<32x32xf32, #tpu.memory_space<vmem>>, %arg3: memref<16x32xf32, #tpu.memory_space<vmem>>, %arg4: memref<32x64xf32, #tpu.memory_space<vmem>>, %arg5: memref<16x16xf32, #tpu.memory_space<vmem>>, %arg6: memref<32x64xf32, #tpu.memory_space<vmem>>, %arg7: memref<1x64xf32, #tpu.memory_space<vmem>>, %arg8: memref<64x128xf32, #tpu.memory_space<vmem>>, %arg9: memref<1x128xf32, #tpu.memory_space<vmem>>, %arg10: memref<16x128xf32, #tpu.memory_space<vmem>>) attributes {dimension_semantics = [#tpu.dimension_semantics<arbitrary>], iteration_bounds = array<i64: 1>, scalar_prefetch = 0 : i64, scratch_operands = 0 : i64, tpu.core_type = #tpu.core_type<tc>, window_params = [{pipeline_mode = #tpu.pipeline_mode<synchronous>, transform_indices = @transform_0, window_bounds = array<i64: 16, 1>}, {pipeline_mode = #tpu.pipeline_mode<synchronous>, transform_indices = @transform_1, window_bounds = array<i64: 32, 32>}, {pipeline_mode = #tpu.pipeline_mode<synchronous>, transform_indices = @transform_2, window_bounds = array<i64: 16, 32>}, {pipeline_mode = #tpu.pipeline_mode<synchronous>, transform_indices = @transform_3, window_bounds = array<i64: 32, 64>}, {pipeline_mode = #tpu.pipeline_mode<synchronous>, transform_indices = @transform_4, window_bounds = array<i64: 16, 16>}, {pipeline_mode = #tpu.pipeline_mode<synchronous>, transform_indices = @transform_5, window_bounds = array<i64: 32, 64>}, {pipeline_mode = #tpu.pipeline_mode<synchronous>, transform_indices = @transform_6, window_bounds = array<i64: 1, 64>}, {pipeline_mode = #tpu.pipeline_mode<synchronous>, transform_indices = @transform_7, window_bounds = array<i64: 64, 128>}, {pipeline_mode = #tpu.pipeline_mode<synchronous>, transform_indices = @transform_8, window_bounds = array<i64: 1, 128>}, {pipeline_mode = #tpu.pipeline_mode<synchronous>, transform_indices = @transform_9, window_bounds = array<i64: 16, 128>}]} {
    %c0 = arith.constant 0 : index
    %c0_0 = arith.constant 0 : index
    %0 = vector.load %arg1[%c0, %c0_0] : memref<16x1xi32, #tpu.memory_space<vmem>>, vector<16x1xi32>
    %1 = tpu.iota {dimensions = array<i32: 1>} : vector<16x32xi32>
    %2 = vector.broadcast %0 : vector<16x1xi32> to vector<16x32xi32>
    %3 = arith.cmpi eq, %1, %2 : vector<16x32xi32>
    %4 = arith.extui %3 : vector<16x32xi1> to vector<16x32xi32>
    %5 = arith.sitofp %4 : vector<16x32xi32> to vector<16x32xf32>
    %6 = arith.truncf %5 : vector<16x32xf32> to vector<16x32xbf16>
    %c0_1 = arith.constant 0 : index
    %c0_2 = arith.constant 0 : index
    %7 = vector.load %arg2[%c0_1, %c0_2] : memref<32x32xf32, #tpu.memory_space<vmem>>, vector<32x32xf32>
    %8 = arith.truncf %7 : vector<32x32xf32> to vector<32x32xbf16>
    %cst = arith.constant dense<0.000000e+00> : vector<16x32xf32>
    %9 = tpu.matmul %6, %8, %cst {dimension_numbers = #tpu.dot_dimension_numbers<[1], [0], [0], [1], [0, 0, 1, 1], [], []>} : vector<16x32xbf16>, vector<32x32xbf16>, vector<16x32xf32> -> vector<16x32xf32>
    %c0_3 = arith.constant 0 : index
    %c0_4 = arith.constant 0 : index
    %10 = vector.load %arg3[%c0_3, %c0_4] : memref<16x32xf32, #tpu.memory_space<vmem>>, vector<16x32xf32>
    %11 = arith.addf %9, %10 : vector<16x32xf32>
    %12 = arith.truncf %11 : vector<16x32xf32> to vector<16x32xbf16>
    %c0_5 = arith.constant 0 : index
    %c0_6 = arith.constant 0 : index
    %13 = vector.load %arg4[%c0_5, %c0_6] : memref<32x64xf32, #tpu.memory_space<vmem>>, vector<32x64xf32>
    %14 = arith.truncf %13 : vector<32x64xf32> to vector<32x64xbf16>
    %cst_7 = arith.constant dense<0.000000e+00> : vector<16x64xf32>
    %15 = tpu.matmul %12, %14, %cst_7 {dimension_numbers = #tpu.dot_dimension_numbers<[1], [0], [0], [1], [0, 0, 1, 1], [], []>} : vector<16x32xbf16>, vector<32x64xbf16>, vector<16x64xf32> -> vector<16x64xf32>
    %16 = vector.extract_strided_slice %15 {offsets = [0, 0], sizes = [16, 32], strides = [1, 1]} : vector<16x64xf32> to vector<16x32xf32>
    %17 = vector.extract_strided_slice %15 {offsets = [0, 32], sizes = [16, 32], strides = [1, 1]} : vector<16x64xf32> to vector<16x32xf32>
    %18 = arith.truncf %16 : vector<16x32xf32> to vector<16x32xbf16>
    %19 = arith.truncf %17 : vector<16x32xf32> to vector<16x32xbf16>
    %cst_8 = arith.constant dense<0.000000e+00> : vector<16x16xf32>
    %20 = tpu.matmul %18, %19, %cst_8 {dimension_numbers = #tpu.dot_dimension_numbers<[1], [1], [0], [0], [0, 0, 1, 0], [], []>} : vector<16x32xbf16>, vector<16x32xbf16>, vector<16x16xf32> -> vector<16x16xf32>
    %cst_9 = arith.constant 0.176776692 : f32
    %21 = vector.broadcast %cst_9 : f32 to vector<16x16xf32>
    %22 = arith.mulf %20, %21 : vector<16x16xf32>
    %c0_10 = arith.constant 0 : index
    %c0_11 = arith.constant 0 : index
    %23 = vector.load %arg5[%c0_10, %c0_11] : memref<16x16xf32, #tpu.memory_space<vmem>>, vector<16x16xf32>
    %24 = arith.addf %22, %23 : vector<16x16xf32>
    %cst_12 = arith.constant dense<0xFF800000> : vector<16xf32>
    %25 = vector.multi_reduction <maximumf>, %24, %cst_12 [1] : vector<16x16xf32> to vector<16xf32>
    %26 = vector.shape_cast %25 : vector<16xf32> to vector<16x1xf32>
    %27 = vector.broadcast %26 : vector<16x1xf32> to vector<16x16xf32>
    %28 = arith.subf %24, %27 : vector<16x16xf32>
    %29 = math.exp %28 : vector<16x16xf32>
    %cst_13 = arith.constant dense<0.000000e+00> : vector<16xf32>
    %30 = vector.multi_reduction <add>, %29, %cst_13 [1] : vector<16x16xf32> to vector<16xf32>
    %31 = vector.shape_cast %30 : vector<16xf32> to vector<16x1xf32>
    %32 = vector.broadcast %31 : vector<16x1xf32> to vector<16x16xf32>
    %33 = arith.divf %29, %32 : vector<16x16xf32>
    %34 = arith.truncf %33 : vector<16x16xf32> to vector<16x16xbf16>
    %35 = arith.truncf %9 : vector<16x32xf32> to vector<16x32xbf16>
    %cst_14 = arith.constant dense<0.000000e+00> : vector<16x32xf32>
    %36 = tpu.matmul %34, %35, %cst_14 {dimension_numbers = #tpu.dot_dimension_numbers<[1], [0], [0], [1], [0, 0, 1, 1], [], []>} : vector<16x16xbf16>, vector<16x32xbf16>, vector<16x32xf32> -> vector<16x32xf32>
    %37 = arith.addf %36, %11 : vector<16x32xf32>
    %38 = arith.truncf %37 : vector<16x32xf32> to vector<16x32xbf16>
    %c0_15 = arith.constant 0 : index
    %c0_16 = arith.constant 0 : index
    %39 = vector.load %arg6[%c0_15, %c0_16] : memref<32x64xf32, #tpu.memory_space<vmem>>, vector<32x64xf32>
    %40 = arith.truncf %39 : vector<32x64xf32> to vector<32x64xbf16>
    %cst_17 = arith.constant dense<0.000000e+00> : vector<16x64xf32>
    %41 = tpu.matmul %38, %40, %cst_17 {dimension_numbers = #tpu.dot_dimension_numbers<[1], [0], [0], [1], [0, 0, 1, 1], [], []>} : vector<16x32xbf16>, vector<32x64xbf16>, vector<16x64xf32> -> vector<16x64xf32>
    %c0_18 = arith.constant 0 : index
    %c0_19 = arith.constant 0 : index
    %42 = vector.load %arg7[%c0_18, %c0_19] : memref<1x64xf32, #tpu.memory_space<vmem>>, vector<1x64xf32>
    %43 = vector.broadcast %42 : vector<1x64xf32> to vector<16x64xf32>
    %44 = arith.addf %41, %43 : vector<16x64xf32>
    %cst_20 = arith.constant 0.000000e+00 : f32
    %45 = vector.broadcast %cst_20 : f32 to vector<16x64xf32>
    %46 = arith.maximumf %44, %45 : vector<16x64xf32>
    %47 = arith.truncf %46 : vector<16x64xf32> to vector<16x64xbf16>
    %c0_21 = arith.constant 0 : index
    %c0_22 = arith.constant 0 : index
    %48 = vector.load %arg8[%c0_21, %c0_22] : memref<64x128xf32, #tpu.memory_space<vmem>>, vector<64x128xf32>
    %49 = arith.truncf %48 : vector<64x128xf32> to vector<64x128xbf16>
    %cst_23 = arith.constant dense<0.000000e+00> : vector<16x128xf32>
    %50 = tpu.matmul %47, %49, %cst_23 {dimension_numbers = #tpu.dot_dimension_numbers<[1], [0], [0], [1], [0, 0, 1, 1], [], []>} : vector<16x64xbf16>, vector<64x128xbf16>, vector<16x128xf32> -> vector<16x128xf32>
    %c0_24 = arith.constant 0 : index
    %c0_25 = arith.constant 0 : index
    %51 = vector.load %arg9[%c0_24, %c0_25] : memref<1x128xf32, #tpu.memory_space<vmem>>, vector<1x128xf32>
    %52 = vector.broadcast %51 : vector<1x128xf32> to vector<16x128xf32>
    %53 = arith.addf %50, %52 : vector<16x128xf32>
    %c0_26 = arith.constant 0 : index
    %c0_27 = arith.constant 0 : index
    %54 = vector.load %arg10[%c0_26, %c0_27] : memref<16x128xf32, #tpu.memory_space<vmem>>, vector<16x128xf32>
    tpu.vector_store %arg10[%c0_26, %c0_27], %53 {strides = array<i32>} : memref<16x128xf32, #tpu.memory_space<vmem>>, vector<16x128xf32>,
    return
  }
  func.func @transform_0(%arg0: i32) -> (i32, i32) {
    %c0_i32 = arith.constant 0 : i32
    %c0_i32_0 = arith.constant 0 : i32
    %c0_i32_1 = arith.constant 0 : i32
    return %c0_i32, %c0_i32_0 : i32, i32
  }
  func.func @transform_1(%arg0: i32) -> (i32, i32) {
    %c0_i32 = arith.constant 0 : i32
    %c0_i32_0 = arith.constant 0 : i32
    %c0_i32_1 = arith.constant 0 : i32
    return %c0_i32, %c0_i32_0 : i32, i32
  }
  func.func @transform_2(%arg0: i32) -> (i32, i32) {
    %c0_i32 = arith.constant 0 : i32
    %c0_i32_0 = arith.constant 0 : i32
    %c0_i32_1 = arith.constant 0 : i32
    return %c0_i32, %c0_i32_0 : i32, i32
  }
  func.func @transform_3(%arg0: i32) -> (i32, i32) {
    %c0_i32 = arith.constant 0 : i32
    %c0_i32_0 = arith.constant 0 : i32
    %c0_i32_1 = arith.constant 0 : i32
    return %c0_i32, %c0_i32_0 : i32, i32
  }
  func.func @transform_4(%arg0: i32) -> (i32, i32) {
    %c0_i32 = arith.constant 0 : i32
    %c0_i32_0 = arith.constant 0 : i32
    %c0_i32_1 = arith.constant 0 : i32
    return %c0_i32, %c0_i32_0 : i32, i32
  }
  func.func @transform_5(%arg0: i32) -> (i32, i32) {
    %c0_i32 = arith.constant 0 : i32
    %c0_i32_0 = arith.constant 0 : i32
    %c0_i32_1 = arith.constant 0 : i32
    return %c0_i32, %c0_i32_0 : i32, i32
  }
  func.func @transform_6(%arg0: i32) -> (i32, i32) {
    %c0_i32 = arith.constant 0 : i32
    %c0_i32_0 = arith.constant 0 : i32
    %c0_i32_1 = arith.constant 0 : i32
    return %c0_i32, %c0_i32_0 : i32, i32
  }
  func.func @transform_7(%arg0: i32) -> (i32, i32) {
    %c0_i32 = arith.constant 0 : i32
    %c0_i32_0 = arith.constant 0 : i32
    %c0_i32_1 = arith.constant 0 : i32
    return %c0_i32, %c0_i32_0 : i32, i32
  }
  func.func @transform_8(%arg0: i32) -> (i32, i32) {
    %c0_i32 = arith.constant 0 : i32
    %c0_i32_0 = arith.constant 0 : i32
    %c0_i32_1 = arith.constant 0 : i32
    return %c0_i32, %c0_i32_0 : i32, i32
  }
  func.func @transform_9(%arg0: i32) -> (i32, i32) {
    %c0_i32 = arith.constant 0 : i32
    %c0_i32_0 = arith.constant 0 : i32
    %c0_i32_1 = arith.constant 0 : i32
    return %c0_i32, %c0_i32_0 : i32, i32
  }
}

</mosaic_0001>

<bundles_post_ra>
// kernel: tpu_custom_call.1
= control target key start
LH: loop header
LB: loop body
LE: loop exit
PB: predicated region body
PF: predicated region fallthrough
CT: control target
= control target key end

     0   :  { %14 = vsyncpa [#allocation3], 0  ;;  %s882_s0 = inlined_call_operand.vmem [shape: s32[16,1], index: 0, kind: input, shape index: {}]   ;;  %s883_s1 = inlined_call_operand.hbm [shape: f32[32,32], index: 1, kind: input, shape index: {}]   ;;  %s884_s2 = inlined_call_operand.vmem [shape: f32[16,32], index: 2, kind: input, shape index: {}]   ;;  %s885_s3 = inlined_call_operand.hbm [shape: f32[32,64], index: 3, kind: input, shape index: {}]   ;;  %s886_s4 = inlined_call_operand.hbm [shape: f32[16,16], index: 4, kind: input, shape index: {}]   ;;  %s887_s5 = inlined_call_operand.hbm [shape: f32[32,64], index: 5, kind: input, shape index: {}]   ;;  %s888_s6 = inlined_call_operand.vmem [shape: f32[1,64], index: 6, kind: input, shape index: {}]   ;;  %s889_s7 = inlined_call_operand.hbm [shape: f32[64,128], index: 7, kind: input, shape index: {}]   ;;  %s890_s8 = inlined_call_operand.vmem [shape: f32[1,128], index: 8, kind: input, shape index: {}]   ;;  %s891_s9 = inlined_call_operand.hbm [shape: f32[16,128], index: 9, kind: output, shape index: {}]  }
   0x1   :  { %15 = vsyncpa [#allocation6], 0 }
   0x2   :  { %16 = vsyncpa [#allocation9], 0 }
   0x3   :  { %17 = vsyncpa [#allocation4], 0  ;;  %s722_s30 = smov [#allocation5]   ;;  %s723_s11 = smov [#allocation8]  }
   0x4   :  { %s39_s10 = sshll.u32 %s722_s30, 4  ;;  %s63_s12 = sshll.u32 %s723_s11, 4  ;;  %s40_s10 = int_to_ptr.vmem [resolvable:$true] %s39_s10  ;;  %s64_s12 = int_to_ptr.vmem [resolvable:$true] %s63_s12 }
   0x5   :  { %s602_s13 = scalar_lea.vmem %s40_s10, 512  ;;  %p607_p1 = scmp.lt.s32.totalorder %s40_s10, %s40_s10 }
   0x6   :  { %p603_p0 = scmp.ne.s32.totalorder %s40_s10, %s602_s13  ;;  %p608_p2 = scmp.lt.s32.totalorder %s602_s13, %s602_s13 }
   0x8   :  { %p609_p3 = por %p608_p2, %p607_p1 }
   0xa   :  { %p610_p4 = pnand %p609_p3, %p603_p0 }
   0xc   :  { %613 = shalt.err (!%p610_p4)
}
   0xd   :  { %s724_s14 = smov 128   ;;  %s725_s15 = smov 8  }
   0xe   :  { %45 = dma.hbm_to_vmem [thread:$0]  %s885_s3, 512, %s40_s10, [#allocation6], %s724_s14, %s724_s14, %s725_s15  }
   0xf   :  { %s622_s18 = scalar_lea.vmem %s64_s12, 512  ;;  %p627_p6 = scmp.lt.s32.totalorder %s64_s12, %s64_s12 }
  0x10   :  { %p623_p5 = scmp.ne.s32.totalorder %s64_s12, %s622_s18  ;;  %p628_p7 = scmp.lt.s32.totalorder %s622_s18, %s622_s18 }
  0x12   :  { %p629_p8 = por %p628_p7, %p627_p6 }
  0x14   :  { %p630_p9 = pnand %p629_p8, %p623_p5 }
  0x16   :  { %633 = shalt.err (!%p630_p9)
}
  0x17   :  { %69 = dma.hbm_to_vmem [thread:$0]  %s887_s5, 512, %s64_s12, [#allocation9], %s724_s14, %s724_s14, %s725_s15  }
  0x18   :  { %s726_s21 = smov [#allocation2]   ;;  %s727_s23 = smov [#allocation7]  }
  0x19   :  { %s25_s22 = sshll.u32 %s726_s21, 4  ;;  %s51_s24 = sshll.u32 %s727_s23, 4  ;;  %s26_s22 = int_to_ptr.vmem [resolvable:$true] %s25_s22  ;;  %s52_s24 = int_to_ptr.vmem [resolvable:$true] %s51_s24 }
  0x1a   :  { %s642_s3 = scalar_lea.vmem %s26_s22, 512  ;;  %p647_p11 = scmp.lt.s32.totalorder %s26_s22, %s26_s22 }
  0x1b   :  { %p643_p10 = scmp.ne.s32.totalorder %s26_s22, %s642_s3  ;;  %p648_p12 = scmp.lt.s32.totalorder %s642_s3, %s642_s3 }
  0x1d   :  { %p649_p13 = por %p648_p12, %p647_p11 }
  0x1f   :  { %p650_p0 = pnand %p649_p13, %p643_p10 }
  0x21   :  { %653 = shalt.err (!%p650_p0)
}
  0x22   :  { %31 = dma.hbm_to_vmem [thread:$0]  %s883_s1, 512, %s26_s22, [#allocation3], %s724_s14, %s724_s14, %s725_s15  }
  0x23   :  { %s662_s5 = scalar_lea.vmem %s52_s24, 256  ;;  %p667_p2 = scmp.lt.s32.totalorder %s52_s24, %s52_s24 }
  0x24   :  { %p663_p1 = scmp.ne.s32.totalorder %s52_s24, %s662_s5  ;;  %p668_p3 = scmp.lt.s32.totalorder %s662_s5, %s662_s5 }
  0x26   :  { %p669_p4 = por %p668_p3, %p667_p2 }
  0x28   :  { %p670_p5 = pnand %p669_p4, %p663_p1 }
  0x2a   :  { %673 = shalt.err (!%p670_p5)
}
  0x2b   :  { %57 = dma.hbm_to_vmem [thread:$0]  %s886_s4, 256, %s52_s24, [#allocation6], %s724_s14, %s724_s14, %s725_s15  }
  0x2c   :  { %s728_s29 = smov [#allocation10]  }
  0x2d   :  { %s77_s30 = sshll.u32 %s728_s29, 4  ;;  %s78_s30 = int_to_ptr.vmem [resolvable:$true] %s77_s30 }
  0x2e   :  { %s682_s10 = scalar_lea.vmem %s78_s30, 1024  ;;  %p687_p7 = scmp.lt.s32.totalorder %s78_s30, %s78_s30 }
  0x2f   :  { %p683_p6 = scmp.ne.s32.totalorder %s78_s30, %s682_s10  ;;  %p688_p8 = scmp.lt.s32.totalorder %s682_s10, %s682_s10 }
  0x31   :  { %p689_p9 = por %p688_p8, %p687_p7 }
  0x33   :  { %p690_p10 = pnand %p689_p9, %p683_p6 }
  0x35   :  { %693 = shalt.err (!%p690_p10)
}
  0x36   :  { %83 = dma.hbm_to_vmem [thread:$0]  %s889_s7, 1024, %s78_s30, [#allocation9], %s724_s14, %s724_s14, %s725_s15  }
  0x37   :  { %714 = dma.done.wait [#allocation3], 512  }
  0x38   :  { %715 = vsyncadd [#allocation3], 4294966784 }
  0x39   :  { %716 = dma.done.wait [#allocation6], 768  }
  0x3a   :  { %717 = vsyncadd [#allocation6], 4294966528 }
  0x3b   :  { %718 = dma.done.wait [#allocation9], 1536  }
  0x3c   :  { %719 = vsyncadd [#allocation9], 4294965760  ;;  %v729_v0 = vmov 0   ;;  %v730_v1 = vmov 0.0   ;;  %v102_v2 = vld [vmem:[%s882_s0] sm:$0xff]  ;;  %v121_v3 = vld [vmem:[#allocation2 + $0x10] sm:$0xff]  ;;  %v104_v10 = vlaneseq }
  0x3d   :  { %585 = vset.pattern.permute.xlu0 %v729_v0  ;;  %525 = vmatprep.subr.bf16.mxu0 %v730_v1  ;;  %v122_v4 = vld [vmem:[#allocation2 + $0x18] sm:$0xff]  ;;  %v119_v5 = vld [vmem:[#allocation2] sm:$0xff]  ;;  %v120_v6 = vld [vmem:[#allocation2 + $0x8] sm:$0xff]  ;;  %vm731_vm0 = vmmov 0   ;;  %vm125_vm3 = vcmask 261120   ;;  %vm282_vm4 = vcmask 130048  }
  0x3e   :  { %533 = vmatprep.subr.bf16.mxu1 %v730_v1  ;;  %107 = vperm.xlu0 %585, %v102_v2   ;;  %v103_v7 = vld [vmem:[%s882_s0 + $0x8] sm:$0xff]  ;;  %v124_v8 = vpack.c.bf16 %v122_v4, %v121_v3  ;;  %v123_v9 = vpack.c.bf16 %v120_v6, %v119_v5  ;;  %v105_v11 = vand.u32 127, %v104_v10  ;;  %v177_v17 = vld [vmem:[#allocation5 + $0x10] sm:$0xff]  ;;  %v178_v18 = vld [vmem:[#allocation5 + $0x18] sm:$0xff]  ;;  %vm431_vm5 = vcmask 523264   ;;  %s733_s23 = smov [#allocation11]  }
  0x3f   :  { %529 = vmatprep.mubr.msk.bf16.mxu0 %vm731_vm0, %v730_v1  ;;  %537 = vmatprep.mubr.msk.bf16.mxu1 %vm731_vm0, %v730_v1  ;;  %v180_v19 = vpack.c.bf16 %v178_v18, %v177_v17  ;;  %v175_v20 = vld [vmem:[#allocation5] sm:$0xff]  ;;  %v176_v21 = vld [vmem:[#allocation5 + $0x8] sm:$0xff]  ;;  %v353_v10 = vld [vmem:[#allocation8 + $0x8] sm:$0xff] }
  0x40   :  { %526 = vmatpush3.bf16.msra.mxu0 %v124_v8  ;;  %v179_v22 = vpack.c.bf16 %v176_v21, %v175_v20  ;;  %v170_v24 = vld [vmem:[%s884_s2] sm:$0xff]  ;;  %v171_v26 = vld [vmem:[%s884_s2 + $0x8] sm:$0xff]  ;;  %s732_s2 = smov 96  }
  0x41   :  { %527 = vmatprep.subr.bf16.mxu0 %v730_v1  ;;  %534 = vmatpush3.bf16.msra.mxu1 %v180_v19  ;;  %v278_v41 = vld [vmem:[#allocation7] sm:$0xff]  ;;  %v279_v46 = vld [vmem:[#allocation7 + $0x8] sm:$0xff] }
  0x42   :  { %110 = vperm.xlu0 %585, %v103_v7   ;;  %535 = vmatprep.subr.bf16.mxu1 %v730_v1  ;;  %v354_v6 = vld [vmem:[#allocation8 + $0x10] sm:$0xff]  ;;  %v355_v7 = vld [vmem:[#allocation8 + $0x18] sm:$0xff] }
  0x43   :  { %v357_v8 = vpack.c.bf16 %v355_v7, %v354_v6 }
  0x44   :  { %528 = vmatpush3.bf16.msra.mxu0 %v123_v9  ;;  %v352_v9 = vld [vmem:[#allocation8] sm:$0xff] }
  0x45   :  { %541 = vmatprep.subr.bf16.mxu0 %v730_v1  ;;  %536 = vmatpush3.bf16.msra.mxu1 %v179_v22  ;;  %v416_v22 = vld [vmem:[#allocation10 + $0x20] sm:$0xff] }
  0x46   :  { %547 = vmatprep.subr.bf16.mxu1 %v730_v1 }
  0xb9   :  { %v108_v12 = vpop.permute.xlu0 %107 }
  0xba   :  { %vm112_vm1 = vcmp.eq.s32.totalorder %v105_v11, %v108_v12  ;;  %v418_v12 = vld [vmem:[#allocation10 + $0x30] sm:$0xff] }
  0xbb   :  { %v497_v14 = vsel %vm112_vm1, 1.0, %v730_v1 }
  0xbd   :  { %v111_v13 = vpop.permute.xlu0 %110 }
  0xbe   :  { %vm113_vm2 = vcmp.eq.s32.totalorder %v105_v11, %v111_v13  ;;  %v356_v11 = vpack.c.bf16 %v353_v10, %v352_v9  ;;  %v419_v13 = vld [vmem:[#allocation10 + $0x38] sm:$0xff] }
  0xbf   :  { %v498_v15 = vsel %vm113_vm2, 1.0, %v730_v1 }
  0xc0   :  { %v118_v16 = vpack.c.bf16 %v498_v15, %v497_v14  ;;  %v423_v14 = vpack.c.bf16 %v419_v13, %v418_v12 }
  0xc2   :  { %530 = vmatmul.mubr.msk.bf16.vlgmr.msra.gmra.mxu0 %vm125_vm3, %v118_v16 }
  0xc3   :  { %543 = vmatprep.mubr.msk.bf16.mxu0 %vm731_vm0, %v730_v1 }
 0x182   :  { %v163_v23 = vpop.f32.mrf.mxu0 }
 0x183   :  { %v841_v28 = vadd.f32 %v170_v24, %v163_v23 }
 0x184   :  { %v531_v25 = vpop.f32.mrf.mxu0 }
 0x185   :  { %v414_v25 = vld [vmem:[#allocation10 + $0x10] sm:$0xff] }
 0x186   :  { %v166_v27 = vpop.f32.mrf.mxu0 }
 0x187   :  { %v843_v29 = vadd.f32 %v171_v26, %v166_v27  ;;  %v306_v32 = vpack.c.bf16 %v166_v27, %v163_v23  ;;  %v417_v23 = vld [vmem:[#allocation10 + $0x28] sm:$0xff]  ;;  %v415_v26 = vld [vmem:[#allocation10 + $0x18] sm:$0xff] }
 0x188   :  { %v532_v30 = vpop.f32.mrf.mxu0  ;;  %v422_v24 = vpack.c.bf16 %v417_v23, %v416_v22  ;;  %v421_v27 = vpack.c.bf16 %v415_v26, %v414_v25 }
 0x189   :  { %v174_v31 = vpack.c.bf16 %v843_v29, %v841_v28  ;;  %v412_v30 = vld [vmem:[#allocation10] sm:$0xff] }
 0x18b   :  { %538 = vmatmul.mubr.msk.bf16.vlgmr.msra.gmra.mxu1 %vm125_vm3, %v174_v31 }
 0x18c   :  { %548 = vmatpush3.bf16.msra.mxu1 %v306_v32  ;;  %549 = vmatprep.mubr.msk.bf16.mxu1 %vm731_vm0, %v730_v1 }
 0x18d   :  { %561 = vmatprep.subr.bf16.mxu1 %v730_v1 }
 0x24b   :  { %v218_v33 = vpop.f32.mrf.mxu1 }
 0x24d   :  { %v539_v34 = vpop.f32.mrf.mxu1 }
 0x24f   :  { %v221_v35 = vpop.f32.mrf.mxu1 }
 0x250   :  { %v225_v36 = vpack.c.bf16 %v221_v35, %v218_v33 }
 0x251   :  { %v540_v37 = vpop.f32.mrf.mxu1 }
 0x252   :  { %227 = vrot.lane.b32.xlu1 %v225_v36, %s732_s2 }
 0x2c4   :  { %v228_v38 = vpop.permute.xlu1 %227 }
 0x2c5   :  { %v233_v39 = vsel %vm125_vm3, %v228_v38, 0 }
 0x2c6   :  { %542 = vmatpush3.bf16.xpose.msra.mxu0 %v233_v39 }
 0x2c7   :  { %553 = vmatprep.subr.bf16.mxu0 %v730_v1 }
 0x2cd   :  { %544 = vmatmul.mubr.msk.bf16.vlgmr.msra.gmra.mxu0 %vm125_vm3, %v225_v36 }
 0x2ce   :  { %557 = vmatprep.mubr.msk.bf16.mxu0 %vm731_vm0, %v730_v1  ;;  %554 = vmatpush3.bf16.msra.mxu0 %v357_v8 }
 0x2cf   :  { %555 = vmatprep.subr.bf16.mxu0 %v730_v1 }
 0x2d2   :  { %556 = vmatpush3.bf16.msra.mxu0 %v356_v11 }
 0x38d   :  { %v269_v40 = vpop.f32.mrf.mxu0 }
 0x38e   :  { %v276_v42 = vmul.f32 0.17677669, %v269_v40 }
 0x38f   :  { %v545_v43 = vpop.f32.mrf.mxu0 }
 0x390   :  { %v280_v44 = vadd.f32 %v278_v41, %v276_v42 }
 0x391   :  { %v272_v45 = vpop.f32.mrf.mxu0 }
 0x392   :  { %v277_v47 = vmul.f32 0.17677669, %v272_v45  ;;  %v283_v48 = vsel %vm282_vm4, %v280_v44, -inf }
 0x393   :  { %284 = vmax.xlane.f32.xlu1 %v283_v48  ;;  %v546_v49 = vpop.f32.mrf.mxu0 }
 0x394   :  { %v281_v50 = vadd.f32 %v279_v46, %v277_v47 }
 0x396   :  { %v286_v51 = vsel %vm282_vm4, %v281_v50, -inf }
 0x397   :  { %287 = vmax.xlane.f32.xlu0 %v286_v51 }
 0x41c   :  { %v285_v52 = vpop.xlane.xlu1 %284 }
 0x41d   :  { %v289_v53 = vsub.f32 %v280_v44, %v285_v52 }
 0x41f   :  { %v291_v54 = vmul.f32 1.442695, %v289_v53 }
 0x420   :  { %v288_v55 = vpop.xlane.xlu0 %287 }
 0x421   :  { %586 = vpow2.f32 %v291_v54  ;;  %v290_v56 = vsub.f32 %v281_v50, %v288_v55 }
 0x423   :  { %v293_v57 = vmul.f32 1.442695, %v290_v56 }
 0x425   :  { %588 = vpow2.f32 %v293_v57 }
 0x42e   :  { %v587_v58 = vpop.eup %586 }
 0x42f   :  { %v295_v59 = vsel %vm282_vm4, %v587_v58, 0.0 }
 0x430   :  { %296 = vadd.xlane.f32.xlu0 %v295_v59 }
 0x432   :  { %v589_v60 = vpop.eup %588 }
 0x433   :  { %v298_v61 = vsel %vm282_vm4, %v589_v60, 0.0 }
 0x434   :  { %299 = vadd.xlane.f32.xlu1 %v298_v61 }
 0x4b9   :  { %v297_v62 = vpop.xlane.xlu0 %296 }
 0x4ba   :  { %590 = vrcp.f32 %v297_v62 }
 0x4bd   :  { %v300_v63 = vpop.xlane.xlu1 %299 }
 0x4be   :  { %592 = vrcp.f32 %v300_v63 }
 0x4c7   :  { %v591_v0 = vpop.eup %590 }
 0x4c8   :  { %v302_v3 = vmul.f32 %v591_v0, %v587_v58 }
 0x4cb   :  { %v593_v2 = vpop.eup %592 }
 0x4cc   :  { %v304_v4 = vmul.f32 %v593_v2, %v589_v60 }
 0x4ce   :  { %v305_v5 = vpack.c.bf16 %v304_v4, %v302_v3 }
 0x4d0   :  { %550 = vmatmul.mubr.msk.bf16.vlgmr.msra.gmra.mxu1 %vm282_vm4, %v305_v5 }
 0x4d1   :  { %569 = vmatprep.mubr.msk.bf16.mxu1 %vm731_vm0, %v730_v1  ;;  %562 = vmatpush3.bf16.msra.mxu1 %v423_v14 }
 0x4d2   :  { %563 = vmatprep.subr.bf16.mxu1 %v730_v1 }
 0x4d5   :  { %564 = vmatpush3.bf16.msra.mxu1 %v422_v24 }
 0x4d6   :  { %565 = vmatprep.subr.bf16.mxu1 %v730_v1 }
 0x4d9   :  { %566 = vmatpush3.bf16.msra.mxu1 %v421_v27 }
 0x4da   :  { %567 = vmatprep.subr.bf16.mxu1 %v730_v1  ;;  %v505_v1 = vld [vmem:[%s890_s8] ss:$0 sm:$0xff] }
 0x590   :  { %v344_v15 = vpop.f32.mrf.mxu1 }
 0x591   :  { %v345_v18 = vadd.f32 %v344_v15, %v841_v28  ;;  %v413_v28 = vld [vmem:[#allocation10 + $0x8] sm:$0xff] }
 0x592   :  { %v551_v16 = vpop.f32.mrf.mxu1  ;;  %v420_v31 = vpack.c.bf16 %v413_v28, %v412_v30 }
 0x594   :  { %v347_v17 = vpop.f32.mrf.mxu1  ;;  %568 = vmatpush3.bf16.msra.mxu1 %v420_v31 }
 0x595   :  { %v348_v19 = vadd.f32 %v347_v17, %v843_v29  ;;  %v503_v29 = vld [vmem:[%s888_s6] ss:$0 sm:$0xff]  ;;  %s483_s6 = sshll.u32 %s733_s23, 4  ;;  %s484_s6 = int_to_ptr.vmem [resolvable:$true] %s483_s6 }
 0x596   :  { %v552_v20 = vpop.f32.mrf.mxu1  ;;  %s694_s24 = scalar_lea.vmem %s484_s6, 256  ;;  %p699_p12 = scmp.lt.s32.totalorder %s484_s6, %s484_s6 }
 0x597   :  { %v351_v21 = vpack.c.bf16 %v348_v19, %v345_v18  ;;  %p695_p11 = scmp.ne.s32.totalorder %s484_s6, %s694_s24  ;;  %p700_p13 = scmp.lt.s32.totalorder %s694_s24, %s694_s24 }
 0x599   :  { %558 = vmatmul.mubr.msk.bf16.vlgmr.msra.gmra.mxu0 %vm125_vm3, %v351_v21  ;;  %p701_p0 = por %p700_p13, %p699_p12 }
 0x59b   :  { %p702_p1 = pnand %p701_p0, %p695_p11 }
 0x659   :  { %v402_v32 = vpop.f32.mrf.mxu0 }
 0x65a   :  { %v403_v34 = vadd.f32 %v503_v29, %v402_v32 }
 0x65b   :  { %v559_v33 = vpop.f32.mrf.mxu0 }
 0x65c   :  { %v409_v38 = vmax.f32 %v403_v34, 0.0 }
 0x65d   :  { %v405_v35 = vpop.f32.mrf.mxu0 }
 0x65e   :  { %v406_v36 = vadd.f32 %v503_v29, %v405_v35 }
 0x65f   :  { %v560_v37 = vpop.f32.mrf.mxu0 }
 0x660   :  { %v410_v39 = vmax.f32 %v406_v36, 0.0 }
 0x662   :  { %v411_v40 = vpack.c.bf16 %v410_v39, %v409_v38 }
 0x664   :  { %570 = vmatmul.mubr.msk.bf16.vlgmr.msra.gmra.mxu1 %vm431_vm5, %v411_v40 }
 0x724   :  { %v469_v41 = vpop.f32.mrf.mxu1 }
 0x725   :  { %v470_v42 = vadd.f32 %v505_v1, %v469_v41 }
 0x726   :  { %v571_v43 = vpop.f32.mrf.mxu1 }
 0x727   :  { %476 = vst [vmem:[#allocation11] sm:$0xff] %v470_v42 }
 0x728   :  { %v472_v44 = vpop.f32.mrf.mxu1 }
 0x729   :  { %v473_v45 = vadd.f32 %v505_v1, %v472_v44 }
 0x72a   :  { %v572_v46 = vpop.f32.mrf.mxu1 }
 0x72b   :  { %477 = vst [vmem:[#allocation11 + $0x8] sm:$0xff] %v473_v45 }
 0x72c   :  { %705 = shalt.err (!%p702_p1)
}
 0x72d   :  { %489 = dma.vmem_to_hbm [thread:$0]  %s484_s6, 256, %s891_s9, [#allocation4], %s724_s14, %s724_s14, %s725_s15  }
 0x72e   :  { %720 = dma.done.wait [#allocation4], 256  }
 0x72f   :  { %721 = vsyncadd [#allocation4], 4294967040 }
 0x730   :  { %493 = vsyncpa [#allocation3], 1 }
 0x731   :  { %494 = vsyncpa [#allocation6], 1 }
 0x732   :  { %495 = vsyncpa [#allocation9], 1 }
 0x733   :  { %496 = vsyncpa [#allocation4], 1 }

</bundles_post_ra>
